<compile_context>
chip_gen: v7x
topology: tpu7x:2x2x1
jax: 0.10.0
libtpu: 0.0.40
codegen_flags: <defaults>
</compile_context>

<pallas_src>
import functools

import jax
import jax.numpy as jnp
import numpy as np
from jax.experimental import pallas as pl
from jax.experimental.pallas import tpu as pltpu


def _round_up(x, m):
    return ((x + m - 1) // m) * m


def _cdiv(a, b):
    return -(-a // b)


# ---------------------------------------------------------------------------
# Fused kernel: one grid axis over row tiles of the flattened image data.
# ---------------------------------------------------------------------------
def _fused_loss_kernel(
    scalars_ref,   # SMEM (2,)  f32   [logvar, sum(p_loss)]
    inp_ref,       # VMEM (TR, LW)    row tile of flattened input
    recon_ref,     # VMEM (TR, LW)    row tile of flattened reconstruction
    mu_ref,        # VMEM (N, LZ)     posterior mean      (resident)
    plv_ref,       # VMEM (N, LZ)     posterior logvar    (resident)
    real_ref,      # VMEM (N, PR)     discriminator logits on real (resident)
    fake_ref,      # VMEM (N, PF)     discriminator logits on fake (resident)
    out_ref,       # SMEM (8,)  f32   packed scalar outputs
    acc_ref,       # VMEM (8, LW) f32 vector partial-sum accumulator
    *, n, d_true, rows, tr, n_real, n_fake,
):
    r = pl.program_id(0)

    @pl.when(r == 0)
    def _init():
        acc_ref[...] = jnp.zeros_like(acc_ref)

    # Cast in-vreg (inputs may be bf16) and take |inp - recon| for this tile.
    diff = jnp.abs(inp_ref[...].astype(jnp.float32)
                   - recon_ref[...].astype(jnp.float32))

    # Ragged-tail handling without any wrapper-side jnp.pad: rows past the
    # true row count hold unspecified data -> select 0 there (static check).
    if rows % tr != 0:
        row_ids = r * tr + jax.lax.broadcasted_iota(jnp.int32, diff.shape, 0)
        diff = jnp.where(row_ids < rows, diff, 0.0)

    # Fold (TR, LW) -> (8, LW) with pure VPU adds; no per-step cross-lane
    # reduce and no SMEM scalar read-modify-write in the steady state.
    folded = diff[0:8, :]
    for s in range(1, tr // 8):
        folded = folded + diff[8 * s:8 * (s + 1), :]
    acc_ref[...] = acc_ref[...] + folded

    @pl.when(r == pl.num_programs(0) - 1)
    def _finalize():
        lv = scalars_ref[0]
        sum_p = scalars_ref[1]

        # Single cross-lane reduction, only at the very end.
        sum_abs = jnp.sum(acc_ref[...])

        # sum(rec_loss) = sum|inp-recon| + D * sum(p_loss)   (p_loss broadcasts
        # over the D image elements of each sample in the reference).
        sum_rec = sum_abs + jnp.float32(d_true) * sum_p
        nll_loss = (jnp.exp(-lv) * sum_rec
                    + jnp.float32(n * d_true) * lv) / jnp.float32(n)
        rec_mean = sum_rec / jnp.float32(n * d_true)

        # Diagonal-Gaussian KL vs N(0, I), batch averaged.
        mu = mu_ref[...].astype(jnp.float32)
        plv = plv_ref[...].astype(jnp.float32)
        kl = 0.5 * jnp.sum(mu * mu + jnp.exp(plv) - 1.0 - plv) / jnp.float32(n)

        # Adversarial / hinge losses; mean(fake) computed once and reused.
        real = real_ref[...].astype(jnp.float32)
        fake = fake_ref[...].astype(jnp.float32)
        real_mean = jnp.sum(real) / jnp.float32(n_real)
        fake_mean = jnp.sum(fake) / jnp.float32(n_fake)
        g_loss = -fake_mean
        hinge = 0.5 * (
            jnp.sum(jnp.maximum(1.0 - real, 0.0)) / jnp.float32(n_real)
            + jnp.sum(jnp.maximum(1.0 + fake, 0.0)) / jnp.float32(n_fake))

        out_ref[0] = nll_loss
        out_ref[1] = rec_mean
        out_ref[2] = kl
        out_ref[3] = g_loss
        out_ref[4] = hinge
        out_ref[5] = real_mean
        out_ref[6] = fake_mean
        out_ref[7] = jnp.float32(0.0)


# ---------------------------------------------------------------------------
# Wrapper
# ---------------------------------------------------------------------------
def fused_loss_scalars(inp, recon, p_loss, post_mu, post_logvar,
                       logits_real, logits_fake, logvar_param,
                       *, tile_bytes=2 * 1024 * 1024, vmem_limit_bytes=None):
    """Returns a packed f32[8] vector:
       [nll, rec_mean, kl, g_loss, hinge, logits_real_mean, logits_fake_mean, 0].

    tile_bytes = target DMA volume per input per grid step.  Good targets:
    v5e ~1-2 MiB, v6e ~2-8 MiB, v7x ~4-8 MiB (keep total VMEM < 32 MiB there).
    """
    n = inp.shape[0]
    d_true = int(np.prod(inp.shape[1:]))
    total = n * d_true
    itemsize = np.dtype(inp.dtype).itemsize
    sub = 16 if itemsize < 4 else 8     # bf16 packs 16 sublanes per vreg

    # Sublane- and lane-dense 2-D view of the image data.  This is a pure
    # reshape of the contiguous buffer (no copy, no jnp.pad).  Prefer the
    # widest lane dim (multiple of 128) that divides the total element count
    # and still leaves >= `sub` rows; otherwise fall back gracefully.
    lw = None
    for cand in (1024, 512, 256, 128):
        if total % cand == 0 and total // cand >= sub:
            lw = cand
            break
    if lw is None:
        for cand in (1024, 512, 256, 128):
            if total % cand == 0:
                lw = cand
                break
    if lw is None:
        lw = inp.shape[-1]              # natural last dim (always divides)
    rows = total // lw
    inp2 = inp.reshape(rows, lw)
    recon2 = recon.reshape(rows, lw)

    # Row tile sized for MiB-scale DMA per grid step (amortizes the ~0.35 us
    # per-step pipeline overhead); multiple of the sublane packing.
    target_rows = max(sub, tile_bytes // max(1, lw * itemsize))
    tr = min(_round_up(target_rows, sub), _round_up(rows, sub))
    num_tiles = _cdiv(rows, tr)

    # Posterior stats / discriminator logits: tiny, resident VMEM blocks.
    lz = int(np.prod(post_mu.shape[1:]))
    mu2 = post_mu.reshape(n, lz)
    plv2 = post_logvar.reshape(n, lz)
    n_real = int(np.prod(logits_real.shape))
    n_fake = int(np.prod(logits_fake.shape))
    real2 = logits_real.reshape(n, n_real // n)
    fake2 = logits_fake.reshape(n, n_fake // n)

    # Two SMEM scalars: logvar parameter and sum(p_loss) (tiny XLA reduce in
    # the wrapper instead of an unrolled SMEM loop in the kernel epilogue).
    scalars = jnp.stack([jnp.asarray(logvar_param, jnp.float32).reshape(()),
                         jnp.sum(jnp.asarray(p_loss, jnp.float32))])

    if vmem_limit_bytes is None:
        per_input = tr * lw * itemsize          # one buffer of one input
        vmem_limit_bytes = int(min(100 * 1024 * 1024,
                                   max(32 * 1024 * 1024, 5 * per_input)))

    kernel = functools.partial(_fused_loss_kernel, n=n, d_true=d_true,
                               rows=rows, tr=tr, n_real=n_real, n_fake=n_fake)
    smem = pl.BlockSpec(memory_space=pltpu.MemorySpace.SMEM)

    packed = pl.pallas_call(
        kernel,
        out_shape=jax.ShapeDtypeStruct((8,), jnp.float32),
        grid_spec=pltpu.PrefetchScalarGridSpec(
            num_scalar_prefetch=0,
            grid=(num_tiles,),
            in_specs=[
                smem,                                              # [logvar, sum_p]
                pl.BlockSpec((tr, lw), lambda r: (r, 0)),          # inp row tile
                pl.BlockSpec((tr, lw), lambda r: (r, 0)),          # recon row tile
                # The four blocks below are tiny and resident (constant
                # index_map); pl.Buffered(1) would shave a few KiB of VMEM but
                # is not worth any compile risk at these sizes.
                pl.BlockSpec((n, lz), lambda r: (0, 0)),           # mu
                pl.BlockSpec((n, lz), lambda r: (0, 0)),           # plogvar
                pl.BlockSpec((n, n_real // n), lambda r: (0, 0)),  # logits_real
                pl.BlockSpec((n, n_fake // n), lambda r: (0, 0)),  # logits_fake
            ],
            out_specs=smem,                                        # packed scalars
            scratch_shapes=[pltpu.VMEM((8, lw), jnp.float32)],     # vector accumulator
        ),
        compiler_params=pltpu.CompilerParams(
            # The single grid axis is the reduction -> "arbitrary".
            # (A 2-way "parallel" row split to use both v7x TensorCores would
            # need per-core partial outputs; left as a follow-up.)
            dimension_semantics=("arbitrary",),
            vmem_limit_bytes=vmem_limit_bytes,
        ),
    )(scalars, inp2, recon2, mu2, plv2, real2, fake2)
    return packed


# ---------------------------------------------------------------------------
# Loss.forward (compute-only re-implementation)
# ---------------------------------------------------------------------------
def adopt_weight(weight, epoch, threshold=0, value=0.0):
    # trace-safe version of the reference's python `if epoch < threshold`
    return jnp.where(jnp.asarray(epoch) < threshold,
                     jnp.float32(value), jnp.float32(weight))


def loss_forward(inp, recon, p_loss, post_mu, post_logvar,
                 logits_real, logits_fake,
                 *, logvar_param, kl_weight, disc_start, epoch,
                 disc_factor=1.0, disc_weight=1.0):
    packed = fused_loss_scalars(inp, recon, p_loss, post_mu, post_logvar,
                                logits_real, logits_fake, logvar_param)
    nll_loss, rec_mean, kl_loss = packed[0], packed[1], packed[2]
    g_loss, hinge_loss = packed[3], packed[4]
    logits_real_mean, logits_fake_mean = packed[5], packed[6]

    # TODO(synk): calculate_adaptive_weight needs torch.autograd.grad through the
    # generator's last layer; with synthesized generator outputs d_weight = disc_weight.
    d_weight = jnp.asarray(disc_weight, jnp.float32)
    df = adopt_weight(disc_factor, epoch, threshold=disc_start)

    loss = nll_loss + kl_weight * kl_loss + d_weight * df * g_loss
    d_loss = df * hinge_loss

    loss_dic = {
        'Loss': loss, 'Loss_recon': rec_mean, 'Loss_nll': nll_loss,
        'Logvar': jnp.asarray(logvar_param, jnp.float32), 'L_KL': kl_loss,
        'Loss_G': g_loss, 'L_disc': d_loss,
        'Logits_real': logits_real_mean, 'Logits_fake': logits_fake_mean,
        'Disc_weight': d_weight, 'Disc_factor': df,
    }
    return recon, rec_mean, loss_dic


# ---------------------------------------------------------------------------
# Pure-jnp reference for correctness checking
# ---------------------------------------------------------------------------
def _reference_scalars(inp, recon, p_loss, post_mu, post_logvar,
                       logits_real, logits_fake, logvar_param):
    n = inp.shape[0]
    rec = jnp.abs(inp - recon) + p_loss            # (N,1,1,1) broadcast
    nll = rec / jnp.exp(logvar_param) + logvar_param
    nll_loss = jnp.sum(nll) / n
    rec_mean = jnp.mean(rec)
    kl = 0.5 * jnp.sum(post_mu ** 2 + jnp.exp(post_logvar)
                       - 1.0 - post_logvar) / n
    g_loss = -jnp.mean(logits_fake)
    hinge = 0.5 * (jnp.mean(jnp.maximum(1.0 - logits_real, 0.0))
                   + jnp.mean(jnp.maximum(1.0 + logits_fake, 0.0)))
    return jnp.stack([nll_loss, rec_mean, kl, g_loss, hinge,
                      jnp.mean(logits_real), jnp.mean(logits_fake)])


# ---------------------------------------------------------------------------
if __name__ == "__main__":
    key = jax.random.PRNGKey(0)
    k1, k2, k3, k4, k5, k6, k7 = jax.random.split(key, 7)

    N, C, H, W = 2, 4, 16, 16          # image batch (NCHW, PyTorch convention)
    ZC, ZH, ZW = 4, 4, 4               # latent of the synthetic posterior
    PH, PW = 6, 6                      # patch-discriminator logit map

    inp = jax.random.normal(k1, (N, C, H, W), jnp.float32)
    recon = inp + 0.1 * jax.random.normal(k2, (N, C, H, W), jnp.float32)
    # TODO(synk): p_loss would come from a full LPIPS/VGG network; synthesized here.
    p_loss = jnp.abs(jax.random.normal(k3, (N, 1, 1, 1), jnp.float32)) * 0.05
    post_mu = jax.random.normal(k4, (N, ZC, ZH, ZW), jnp.float32)
    post_logvar = 0.1 * jax.random.normal(k5, (N, ZC, ZH, ZW), jnp.float32)
    logits_real = jax.random.normal(k6, (N, 1, PH, PW), jnp.float32)
    logits_fake = jax.random.normal(k7, (N, 1, PH, PW), jnp.float32)

    # Deterministic module parameters / hyper-params (Loss.__init__):
    logvar_param = jnp.float32(0.0)    # nn.Parameter(torch.ones(()) * 0.0)
    kl_weight = 1e-6                   # dic['w_kl']
    disc_start = 5                     # dic['pretrain']
    epoch = 10

    # Kernel vs. pure-jnp reference
    packed = fused_loss_scalars(inp, recon, p_loss, post_mu, post_logvar,
                                logits_real, logits_fake, logvar_param)
    jax.block_until_ready(packed)
    ref = _reference_scalars(inp, recon, p_loss, post_mu, post_logvar,
                             logits_real, logits_fake, logvar_param)
    np.testing.assert_allclose(np.asarray(packed[:7]), np.asarray(ref),
                               rtol=1e-4, atol=1e-5)

    recon_out, rec_mean, loss_dic = loss_forward(
        inp, recon, p_loss, post_mu, post_logvar, logits_real, logits_fake,
        logvar_param=logvar_param, kl_weight=kl_weight,
        disc_start=disc_start, epoch=epoch)

    jax.block_until_ready(loss_dic['Loss'])
    print("KERNEL_OK")
</pallas_src>

<mosaic_0001>
module attributes {stable_mosaic.version = 11 : i64} {
  func.func @_fused_loss_kernel(%arg0: i32, %arg1: memref<2xf32, #tpu.memory_space<smem>>, %arg2: memref<8x256xf32, #tpu.memory_space<vmem>>, %arg3: memref<8x256xf32, #tpu.memory_space<vmem>>, %arg4: memref<2x64xf32, #tpu.memory_space<vmem>>, %arg5: memref<2x64xf32, #tpu.memory_space<vmem>>, %arg6: memref<2x36xf32, #tpu.memory_space<vmem>>, %arg7: memref<2x36xf32, #tpu.memory_space<vmem>>, %arg8: memref<8xf32, #tpu.memory_space<smem>>, %arg9: memref<8x256xf32, #tpu.memory_space<vmem>>) attributes {dimension_semantics = [#tpu.dimension_semantics<arbitrary>], iteration_bounds = array<i64: 1>, scalar_prefetch = 0 : i64, scratch_operands = 1 : i64, tpu.core_type = #tpu.core_type<tc>, window_params = [{transform_indices = @transform_0, window_bounds = array<i64: 2>}, {transform_indices = @transform_1, window_bounds = array<i64: 8, 256>}, {transform_indices = @transform_2, window_bounds = array<i64: 8, 256>}, {pipeline_mode = #tpu.pipeline_mode<synchronous>, transform_indices = @transform_3, window_bounds = array<i64: 2, 64>}, {pipeline_mode = #tpu.pipeline_mode<synchronous>, transform_indices = @transform_4, window_bounds = array<i64: 2, 64>}, {pipeline_mode = #tpu.pipeline_mode<synchronous>, transform_indices = @transform_5, window_bounds = array<i64: 2, 36>}, {pipeline_mode = #tpu.pipeline_mode<synchronous>, transform_indices = @transform_6, window_bounds = array<i64: 2, 36>}, {transform_indices = @transform_7, window_bounds = array<i64: 8>}]} {
    %c0_i32 = arith.constant 0 : i32
    %0 = arith.cmpi eq, %arg0, %c0_i32 : i32
    %1 = arith.extui %0 : i1 to i32
    %c0_i32_0 = arith.constant 0 : i32
    %2 = arith.cmpi ne, %1, %c0_i32_0 : i32
    scf.if %2 {
      %cst = arith.constant 0.000000e+00 : f32
      %13 = vector.broadcast %cst : f32 to vector<8x256xf32>
      %c0_10 = arith.constant 0 : index
      %c0_11 = arith.constant 0 : index
      %14 = vector.load %arg9[%c0_10, %c0_11] : memref<8x256xf32, #tpu.memory_space<vmem>>, vector<8x256xf32>
      tpu.vector_store %arg9[%c0_10, %c0_11], %13 {strides = array<i32>} : memref<8x256xf32, #tpu.memory_space<vmem>>, vector<8x256xf32>,
    } else {
    }
    %c0 = arith.constant 0 : index
    %c0_1 = arith.constant 0 : index
    %3 = vector.load %arg2[%c0, %c0_1] : memref<8x256xf32, #tpu.memory_space<vmem>>, vector<8x256xf32>
    %c0_2 = arith.constant 0 : index
    %c0_3 = arith.constant 0 : index
    %4 = vector.load %arg3[%c0_2, %c0_3] : memref<8x256xf32, #tpu.memory_space<vmem>>, vector<8x256xf32>
    %5 = arith.subf %3, %4 : vector<8x256xf32>
    %6 = math.absf %5 : vector<8x256xf32>
    %c0_4 = arith.constant 0 : index
    %c0_5 = arith.constant 0 : index
    %7 = vector.load %arg9[%c0_4, %c0_5] : memref<8x256xf32, #tpu.memory_space<vmem>>, vector<8x256xf32>
    %8 = arith.addf %7, %6 : vector<8x256xf32>
    %c0_6 = arith.constant 0 : index
    %c0_7 = arith.constant 0 : index
    %9 = vector.load %arg9[%c0_6, %c0_7] : memref<8x256xf32, #tpu.memory_space<vmem>>, vector<8x256xf32>
    tpu.vector_store %arg9[%c0_6, %c0_7], %8 {strides = array<i32>} : memref<8x256xf32, #tpu.memory_space<vmem>>, vector<8x256xf32>,
    %c0_i32_8 = arith.constant 0 : i32
    %10 = arith.cmpi eq, %arg0, %c0_i32_8 : i32
    %11 = arith.extui %10 : i1 to i32
    %c0_i32_9 = arith.constant 0 : i32
    %12 = arith.cmpi ne, %11, %c0_i32_9 : i32
    scf.if %12 {
      %c0_10 = arith.constant 0 : index
      %13 = memref.load %arg1[%c0_10] : memref<2xf32, #tpu.memory_space<smem>>
      %c1 = arith.constant 1 : index
      %14 = memref.load %arg1[%c1] : memref<2xf32, #tpu.memory_space<smem>>
      %c0_11 = arith.constant 0 : index
      %c0_12 = arith.constant 0 : index
      %15 = vector.load %arg9[%c0_11, %c0_12] : memref<8x256xf32, #tpu.memory_space<vmem>>, vector<8x256xf32>
      %16 = vector.shape_cast %15 : vector<8x256xf32> to vector<1x8x256xf32>
      %cst = arith.constant dense<0.000000e+00> : vector<1xf32>
      %17 = vector.multi_reduction <add>, %16, %cst [1, 2] : vector<1x8x256xf32> to vector<1xf32>
      %18 = vector.shape_cast %17 : vector<1xf32> to vector<1x1x1xf32>
      %19 = vector.extract %18[0, 0, 0] : f32 from vector<1x1x1xf32>
      %cst_13 = arith.constant 1.024000e+03 : f32
      %20 = arith.mulf %cst_13, %14 : f32
      %21 = arith.addf %19, %20 : f32
      %cst_14 = arith.constant 0.000000e+00 : f32
      %22 = arith.subf %cst_14, %13 : f32
      %23 = math.exp %22 : f32
      %24 = arith.mulf %23, %21 : f32
      %cst_15 = arith.constant 2.048000e+03 : f32
      %25 = arith.mulf %cst_15, %13 : f32
      %26 = arith.addf %24, %25 : f32
      %cst_16 = arith.constant 2.000000e+00 : f32
      %27 = arith.divf %26, %cst_16 : f32
      %cst_17 = arith.constant 2.048000e+03 : f32
      %28 = arith.divf %21, %cst_17 : f32
      %c0_18 = arith.constant 0 : index
      %c0_19 = arith.constant 0 : index
      %29 = vector.load %arg4[%c0_18, %c0_19] : memref<2x64xf32, #tpu.memory_space<vmem>>, vector<2x64xf32>
      %c0_20 = arith.constant 0 : index
      %c0_21 = arith.constant 0 : index
      %30 = vector.load %arg5[%c0_20, %c0_21] : memref<2x64xf32, #tpu.memory_space<vmem>>, vector<2x64xf32>
      %31 = arith.mulf %29, %29 : vector<2x64xf32>
      %32 = math.exp %30 : vector<2x64xf32>
      %33 = arith.addf %31, %32 : vector<2x64xf32>
      %cst_22 = arith.constant 1.000000e+00 : f32
      %34 = vector.broadcast %cst_22 : f32 to vector<2x64xf32>
      %35 = arith.subf %33, %34 : vector<2x64xf32>
      %36 = arith.subf %35, %30 : vector<2x64xf32>
      %37 = vector.shape_cast %36 : vector<2x64xf32> to vector<1x2x64xf32>
      %cst_23 = arith.constant dense<0.000000e+00> : vector<1xf32>
      %38 = vector.multi_reduction <add>, %37, %cst_23 [1, 2] : vector<1x2x64xf32> to vector<1xf32>
      %39 = vector.shape_cast %38 : vector<1xf32> to vector<1x1x1xf32>
      %40 = vector.extract %39[0, 0, 0] : f32 from vector<1x1x1xf32>
      %cst_24 = arith.constant 5.000000e-01 : f32
      %41 = arith.mulf %cst_24, %40 : f32
      %cst_25 = arith.constant 2.000000e+00 : f32
      %42 = arith.divf %41, %cst_25 : f32
      %c0_26 = arith.constant 0 : index
      %c0_27 = arith.constant 0 : index
      %43 = vector.load %arg6[%c0_26, %c0_27] : memref<2x36xf32, #tpu.memory_space<vmem>>, vector<2x36xf32>
      %c0_28 = arith.constant 0 : index
      %c0_29 = arith.constant 0 : index
      %44 = vector.load %arg7[%c0_28, %c0_29] : memref<2x36xf32, #tpu.memory_space<vmem>>, vector<2x36xf32>
      %45 = vector.shape_cast %43 : vector<2x36xf32> to vector<1x2x36xf32>
      %cst_30 = arith.constant dense<0.000000e+00> : vector<1xf32>
      %46 = vector.multi_reduction <add>, %45, %cst_30 [1, 2] : vector<1x2x36xf32> to vector<1xf32>
      %47 = vector.shape_cast %46 : vector<1xf32> to vector<1x1x1xf32>
      %48 = vector.extract %47[0, 0, 0] : f32 from vector<1x1x1xf32>
      %cst_31 = arith.constant 7.200000e+01 : f32
      %49 = arith.divf %48, %cst_31 : f32
      %50 = vector.shape_cast %44 : vector<2x36xf32> to vector<1x2x36xf32>
      %cst_32 = arith.constant dense<0.000000e+00> : vector<1xf32>
      %51 = vector.multi_reduction <add>, %50, %cst_32 [1, 2] : vector<1x2x36xf32> to vector<1xf32>
      %52 = vector.shape_cast %51 : vector<1xf32> to vector<1x1x1xf32>
      %53 = vector.extract %52[0, 0, 0] : f32 from vector<1x1x1xf32>
      %cst_33 = arith.constant 7.200000e+01 : f32
      %54 = arith.divf %53, %cst_33 : f32
      %cst_34 = arith.constant 0.000000e+00 : f32
      %55 = arith.subf %cst_34, %54 : f32
      %cst_35 = arith.constant 1.000000e+00 : f32
      %56 = vector.broadcast %cst_35 : f32 to vector<2x36xf32>
      %57 = arith.subf %56, %43 : vector<2x36xf32>
      %cst_36 = arith.constant 0.000000e+00 : f32
      %58 = vector.broadcast %cst_36 : f32 to vector<2x36xf32>
      %59 = arith.maximumf %57, %58 : vector<2x36xf32>
      %60 = vector.shape_cast %59 : vector<2x36xf32> to vector<1x2x36xf32>
      %cst_37 = arith.constant dense<0.000000e+00> : vector<1xf32>
      %61 = vector.multi_reduction <add>, %60, %cst_37 [1, 2] : vector<1x2x36xf32> to vector<1xf32>
      %62 = vector.shape_cast %61 : vector<1xf32> to vector<1x1x1xf32>
      %63 = vector.extract %62[0, 0, 0] : f32 from vector<1x1x1xf32>
      %cst_38 = arith.constant 7.200000e+01 : f32
      %64 = arith.divf %63, %cst_38 : f32
      %cst_39 = arith.constant 1.000000e+00 : f32
      %65 = vector.broadcast %cst_39 : f32 to vector<2x36xf32>
      %66 = arith.addf %65, %44 : vector<2x36xf32>
      %cst_40 = arith.constant 0.000000e+00 : f32
      %67 = vector.broadcast %cst_40 : f32 to vector<2x36xf32>
      %68 = arith.maximumf %66, %67 : vector<2x36xf32>
      %69 = vector.shape_cast %68 : vector<2x36xf32> to vector<1x2x36xf32>
      %cst_41 = arith.constant dense<0.000000e+00> : vector<1xf32>
      %70 = vector.multi_reduction <add>, %69, %cst_41 [1, 2] : vector<1x2x36xf32> to vector<1xf32>
      %71 = vector.shape_cast %70 : vector<1xf32> to vector<1x1x1xf32>
      %72 = vector.extract %71[0, 0, 0] : f32 from vector<1x1x1xf32>
      %cst_42 = arith.constant 7.200000e+01 : f32
      %73 = arith.divf %72, %cst_42 : f32
      %74 = arith.addf %64, %73 : f32
      %cst_43 = arith.constant 5.000000e-01 : f32
      %75 = arith.mulf %cst_43, %74 : f32
      %c0_44 = arith.constant 0 : index
      %76 = memref.load %arg8[%c0_44] : memref<8xf32, #tpu.memory_space<smem>>
      memref.store %27, %arg8[%c0_44] : memref<8xf32, #tpu.memory_space<smem>>
      %c1_45 = arith.constant 1 : index
      %77 = memref.load %arg8[%c1_45] : memref<8xf32, #tpu.memory_space<smem>>
      memref.store %28, %arg8[%c1_45] : memref<8xf32, #tpu.memory_space<smem>>
      %c2 = arith.constant 2 : index
      %78 = memref.load %arg8[%c2] : memref<8xf32, #tpu.memory_space<smem>>
      memref.store %42, %arg8[%c2] : memref<8xf32, #tpu.memory_space<smem>>
      %c3 = arith.constant 3 : index
      %79 = memref.load %arg8[%c3] : memref<8xf32, #tpu.memory_space<smem>>
      memref.store %55, %arg8[%c3] : memref<8xf32, #tpu.memory_space<smem>>
      %c4 = arith.constant 4 : index
      %80 = memref.load %arg8[%c4] : memref<8xf32, #tpu.memory_space<smem>>
      memref.store %75, %arg8[%c4] : memref<8xf32, #tpu.memory_space<smem>>
      %c5 = arith.constant 5 : index
      %81 = memref.load %arg8[%c5] : memref<8xf32, #tpu.memory_space<smem>>
      memref.store %49, %arg8[%c5] : memref<8xf32, #tpu.memory_space<smem>>
      %c6 = arith.constant 6 : index
      %82 = memref.load %arg8[%c6] : memref<8xf32, #tpu.memory_space<smem>>
      memref.store %54, %arg8[%c6] : memref<8xf32, #tpu.memory_space<smem>>
      %cst_46 = arith.constant 0.000000e+00 : f32
      %c7 = arith.constant 7 : index
      %83 = memref.load %arg8[%c7] : memref<8xf32, #tpu.memory_space<smem>>
      memref.store %cst_46, %arg8[%c7] : memref<8xf32, #tpu.memory_space<smem>>
    } else {
    }
    return
  }
  func.func @transform_0(%arg0: i32) -> i32 {
    %c0_i32 = arith.constant 0 : i32
    %c0_i32_0 = arith.constant 0 : i32
    return %c0_i32 : i32
  }
  func.func @transform_1(%arg0: i32) -> (i32, i32) {
    %c0_i32 = arith.constant 0 : i32
    %c0_i32_0 = arith.constant 0 : i32
    return %arg0, %c0_i32 : i32, i32
  }
  func.func @transform_2(%arg0: i32) -> (i32, i32) {
    %c0_i32 = arith.constant 0 : i32
    %c0_i32_0 = arith.constant 0 : i32
    return %arg0, %c0_i32 : i32, i32
  }
  func.func @transform_3(%arg0: i32) -> (i32, i32) {
    %c0_i32 = arith.constant 0 : i32
    %c0_i32_0 = arith.constant 0 : i32
    %c0_i32_1 = arith.constant 0 : i32
    return %c0_i32, %c0_i32_0 : i32, i32
  }
  func.func @transform_4(%arg0: i32) -> (i32, i32) {
    %c0_i32 = arith.constant 0 : i32
    %c0_i32_0 = arith.constant 0 : i32
    %c0_i32_1 = arith.constant 0 : i32
    return %c0_i32, %c0_i32_0 : i32, i32
  }
  func.func @transform_5(%arg0: i32) -> (i32, i32) {
    %c0_i32 = arith.constant 0 : i32
    %c0_i32_0 = arith.constant 0 : i32
    %c0_i32_1 = arith.constant 0 : i32
    return %c0_i32, %c0_i32_0 : i32, i32
  }
  func.func @transform_6(%arg0: i32) -> (i32, i32) {
    %c0_i32 = arith.constant 0 : i32
    %c0_i32_0 = arith.constant 0 : i32
    %c0_i32_1 = arith.constant 0 : i32
    return %c0_i32, %c0_i32_0 : i32, i32
  }
  func.func @transform_7(%arg0: i32) -> i32 {
    %c0_i32 = arith.constant 0 : i32
    %c0_i32_0 = arith.constant 0 : i32
    return %c0_i32 : i32
  }
}

</mosaic_0001>

<bundles_post_ra>
// kernel: tpu_custom_call.1
= control target key start
LH: loop header
LB: loop body
LE: loop exit
PB: predicated region body
PF: predicated region fallthrough
CT: control target
= control target key end

     0   :  { %12 = vsyncpa [#allocation5], 0  ;;  %s442_s0 = inlined_call_operand.hbm [shape: f32[2], index: 0, kind: input, shape index: {}]   ;;  %s443_s1 = inlined_call_operand.hbm [shape: f32[8,256], index: 1, kind: input, shape index: {}]   ;;  %s444_s2 = inlined_call_operand.hbm [shape: f32[8,256], index: 2, kind: input, shape index: {}]   ;;  %s445_s3 = inlined_call_operand.vmem [shape: f32[2,64], index: 3, kind: input, shape index: {}]   ;;  %s446_s4 = inlined_call_operand.vmem [shape: f32[2,64], index: 4, kind: input, shape index: {}]   ;;  %s447_s5 = inlined_call_operand.vmem [shape: f32[2,36], index: 5, kind: input, shape index: {}]   ;;  %s448_s6 = inlined_call_operand.vmem [shape: f32[2,36], index: 6, kind: input, shape index: {}]   ;;  %s449_s7 = inlined_call_operand.hbm [shape: f32[8], index: 7, kind: output, shape index: {}]  }
   0x1   :  { %13 = vsyncpa [#allocation4], 0 }
   0x2   :  { %14 = vsyncpa [#allocation9], 0 }
   0x3   :  { %15 = vsyncpa [#allocation6], 0  ;;  %s257_s26 = scalar_lea.hbm %s442_s0, 16 }
   0x4   :  { %p258_p0 = scmp.ne.s32.totalorder %s442_s0, %s257_s26  ;;  %p261_p1 = scmp.lt.u32.totalorder %s257_s26, %s442_s0 }
   0x6   :  { %p263_p2 = pnand %p261_p1, %p258_p0 }
   0x8   :  { %266 = shalt.err (!%p263_p2)
}
   0x9   :  { %s329_s8 = smov [#allocation3]   ;;  %s330_s11 = smov [#allocation7]  }
   0xa   :  { %23 = dma.hbm_to_smem %s442_s0, 16, %s329_s8, [#allocation5]  }
   0xb   :  { %s30_s12 = sshll.u32 %s330_s11, 4  ;;  %s331_s13 = smov [#allocation8]   ;;  %s31_s12 = int_to_ptr.vmem [resolvable:$true] %s30_s12 }
   0xc   :  { %s40_s14 = sshll.u32 %s331_s13, 4  ;;  %s267_s17 = scalar_lea.hbm %s443_s1, 256  ;;  %s41_s14 = int_to_ptr.vmem [resolvable:$true] %s40_s14 }
   0xd   :  { %p268_p3 = scmp.ne.s32.totalorder %s443_s1, %s267_s17  ;;  %p271_p4 = scmp.lt.u32.totalorder %s267_s17, %s443_s1 }
   0xf   :  { %p273_p5 = pnand %p271_p4, %p268_p3 }
  0x11   :  { %276 = shalt.err (!%p273_p5)
}
  0x12   :  { %s277_s0 = scalar_lea.vmem %s31_s12, 256  ;;  %p282_p7 = scmp.lt.s32.totalorder %s31_s12, %s31_s12 }
  0x13   :  { %p278_p6 = scmp.ne.s32.totalorder %s31_s12, %s277_s0  ;;  %p283_p8 = scmp.lt.s32.totalorder %s277_s0, %s277_s0 }
  0x15   :  { %p284_p9 = por %p283_p8, %p282_p7 }
  0x17   :  { %p285_p10 = pnand %p284_p9, %p278_p6 }
  0x19   :  { %288 = shalt.err (!%p285_p10)
}
  0x1a   :  { %33 = dma.hbm_to_vmem [thread:$0]  %s443_s1, 256, %s31_s12, [#allocation4]  }
  0x1b   :  { %s289_s26 = scalar_lea.hbm %s444_s2, 256 }
  0x1c   :  { %p290_p11 = scmp.ne.s32.totalorder %s444_s2, %s289_s26  ;;  %p293_p12 = scmp.lt.u32.totalorder %s289_s26, %s444_s2 }
  0x1e   :  { %p295_p13 = pnand %p293_p12, %p290_p11 }
  0x20   :  { %298 = shalt.err (!%p295_p13)
}
  0x21   :  { %s299_s8 = scalar_lea.vmem %s41_s14, 256  ;;  %p304_p1 = scmp.lt.s32.totalorder %s41_s14, %s41_s14 }
  0x22   :  { %p300_p0 = scmp.ne.s32.totalorder %s41_s14, %s299_s8  ;;  %p305_p2 = scmp.lt.s32.totalorder %s299_s8, %s299_s8 }
  0x24   :  { %p306_p3 = por %p305_p2, %p304_p1 }
  0x26   :  { %p307_p4 = pnand %p306_p3, %p300_p0 }
  0x28   :  { %310 = shalt.err (!%p307_p4)
}
  0x29   :  { %43 = dma.hbm_to_vmem [thread:$0]  %s444_s2, 256, %s41_s14, [#allocation9]  }
  0x2a   :  { %321 = dma.done.wait [#allocation5], 16  }
  0x2b   :  { %322 = vsyncadd [#allocation5], 4294967280 }
  0x2c   :  { %323 = dma.done.wait [#allocation4], 256  }
  0x2d   :  { %324 = vsyncadd [#allocation4], 4294967040 }
  0x2e   :  { %325 = dma.done.wait [#allocation9], 256  }
  0x2f   :  { %326 = vsyncadd [#allocation9], 4294967040 }
  0x30   :  { %61 = sfence }
  0x31   :  { %v138_v0 = vld [vmem:[%s447_s5] sm:$0x3]  ;;  %vm140_vm0 = vcmask 287744   ;;  %v69_v2 = vld [vmem:[#allocation7 + $0x8] sm:$0xff]  ;;  %v70_v4 = vld [vmem:[#allocation8] sm:$0xff]  ;;  %vm123_vm1 = vcmask 517120  }
  0x32   :  { %v68_v1 = vld [vmem:[#allocation7] sm:$0xff]  ;;  %v141_v3 = vsel %vm140_vm0, %v138_v0, 0.0  ;;  %v71_v5 = vld [vmem:[#allocation8 + $0x8] sm:$0xff]  ;;  %v168_v21 = vsub.f32 1.0, %v138_v0  ;;  %s426_s15 = sld [smem:[#allocation3]]  ;;  %s232_s16 = sld [smem:[#allocation3 + $0x1]] }
  0x33   :  { %v139_v6 = vld [vmem:[%s448_s6] sm:$0x3]  ;;  %142 = vadd.xlane.f32.xlu1 %v141_v3  ;;  %v72_v7 = vsub.f32 %v68_v1, %v70_v4  ;;  %v73_v8 = vsub.f32 %v69_v2, %v71_v5  ;;  %s311_s6 = scalar_lea.hbm %s449_s7, 16 }
  0x34   :  { %v183_v9 = vadd.f32 1.0, %v139_v6  ;;  %v116_v10 = vld [vmem:[%s446_s4] sm:$0x3]  ;;  %v154_v11 = vsel %vm140_vm0, %v139_v6, 0.0  ;;  %v169_v24 = vmax.f32 %v168_v21, 0.0  ;;  %s332_s4 = smov 0.0   ;;  %p312_p5 = scmp.ne.s32.totalorder %s449_s7, %s311_s6 }
  0x35   :  { %v118_v12 = vmul.f32 1.442695, %v116_v10  ;;  %v74_v13 = vand.u32 2147483647, %v72_v7  ;;  %v75_v14 = vand.u32 2147483647, %v73_v8  ;;  %p315_p6 = scmp.lt.u32.totalorder %s311_s6, %s449_s7 }
  0x36   :  { %v184_v15 = vmax.f32 %v183_v9, 0.0  ;;  %v115_v18 = vld [vmem:[%s445_s3] sm:$0x3]  ;;  %v170_v27 = vsel %vm140_vm0, %v169_v24, 0.0  ;;  %215 = sst [smem:[#allocation10 + $0x7]] %s332_s4 }
  0x37   :  { %253 = vpow2.f32 %v118_v12  ;;  %v89_v16 = vadd.f32 %v75_v14, %v74_v13  ;;  %155 = vadd.xlane.f32.xlu1 %v154_v11  ;;  %v117_v19 = vmul.f32 %v115_v18, %v115_v18  ;;  %p317_p7 = pnand %p315_p6, %p312_p5 }
  0x38   :  { %v185_v17 = vsel %vm140_vm0, %v184_v15, 0.0  ;;  %s101_s3 = ssub.f32 0.0, %s426_s15  ;;  %s99_s17 = smul.f32 1024.0, %s232_s16 }
  0x39   :  { %90 = vadd.xlane.f32.xlu0 %v89_v16  ;;  %s107_s21 = smul.f32 2048.0, %s426_s15 }
  0x3a   :  { %v102_v28 = vstv %s101_s3 }
  0x3b   :  { %186 = vadd.xlane.f32.xlu1 %v185_v17  ;;  %v103_v30 = vmul.f32 1.442695, %v102_v28 }
  0x3d   :  { %255 = vpow2.f32 %v103_v30 }
  0x41   :  { %v254_v20 = vpop.eup %253 }
  0x42   :  { %v120_v22 = vadd.f32 %v254_v20, %v117_v19 }
  0x44   :  { %v233_v23 = vadd.f32 -1.0, %v120_v22 }
  0x46   :  { %v122_v25 = vsub.f32 %v233_v23, %v116_v10 }
  0x47   :  { %v256_v41 = vpop.eup %255 }
  0x48   :  { %v124_v26 = vsel %vm123_vm1, %v122_v25, 0.0 }
  0x49   :  { %125 = vadd.xlane.f32.xlu0 %v124_v26 }
  0x4d   :  { %171 = vadd.xlane.f32.xlu0 %v170_v27 }
  0xc0   :  { %v143_v29 = vpop.xlane.xlu1 %142 }
  0xc1   :  { %v144_v36 = vrot.slane %v143_v29, 4 }
  0xc3   :  { %v145_v42 = vadd.f32 %v144_v36, %v143_v29 }
  0xc4   :  { %v156_v33 = vpop.xlane.xlu1 %155 }
  0xc5   :  { %v157_v38 = vrot.slane %v156_v33, 4  ;;  %v146_v46 = vrot.slane %v145_v42, 2 }
  0xc6   :  { %v91_v31 = vpop.xlane.xlu0 %90 }
  0xc7   :  { %v92_v32 = vrot.slane %v91_v31, 4  ;;  %v158_v45 = vadd.f32 %v157_v38, %v156_v33  ;;  %v147_v54 = vadd.f32 %v146_v46, %v145_v42 }
  0xc8   :  { %v187_v39 = vpop.xlane.xlu1 %186 }
  0xc9   :  { %v93_v34 = vadd.f32 %v92_v32, %v91_v31  ;;  %v188_v43 = vrot.slane %v187_v39, 4  ;;  %v159_v49 = vrot.slane %v158_v45, 2  ;;  %v148_v61 = vrot.slane %v147_v54, 1 }
  0xcb   :  { %v94_v35 = vrot.slane %v93_v34, 2  ;;  %v189_v47 = vadd.f32 %v188_v43, %v187_v39  ;;  %v160_v57 = vadd.f32 %v159_v49, %v158_v45  ;;  %v149_v3 = vadd.f32 %v148_v61, %v147_v54 }
  0xcd   :  { %v95_v37 = vadd.f32 %v94_v35, %v93_v34  ;;  %v190_v52 = vrot.slane %v189_v47, 2  ;;  %v161_v0 = vrot.slane %v160_v57, 1 }
  0xcf   :  { %v96_v40 = vrot.slane %v95_v37, 1  ;;  %v191_v60 = vadd.f32 %v190_v52, %v189_v47  ;;  %v162_v5 = vadd.f32 %v161_v0, %v160_v57 }
  0xd1   :  { %v97_v44 = vadd.f32 %v96_v40, %v95_v37  ;;  %v192_v4 = vrot.slane %v191_v60, 1 }
  0xd3   :  { %234 = vpush %v97_v44  ;;  %v193_v8 = vadd.f32 %v192_v4, %v191_v60 }
  0xd4   :  { %236 = vpush %v256_v41 }
  0xd6   :  { %v126_v48 = vpop.xlane.xlu0 %125 }
  0xd7   :  { %v127_v50 = vrot.slane %v126_v48, 4 }
  0xd9   :  { %v128_v51 = vadd.f32 %v127_v50, %v126_v48 }
  0xda   :  { %v172_v53 = vpop.xlane.xlu0 %171 }
  0xdb   :  { %v129_v55 = vrot.slane %v128_v51, 2  ;;  %v173_v56 = vrot.slane %v172_v53, 4 }
  0xdd   :  { %v174_v58 = vadd.f32 %v173_v56, %v172_v53  ;;  %v130_v59 = vadd.f32 %v129_v55, %v128_v51 }
  0xdf   :  { %v175_v62 = vrot.slane %v174_v58, 2  ;;  %v131_v63 = vrot.slane %v130_v59, 1 }
  0xe1   :  { %v176_v1 = vadd.f32 %v175_v62, %v174_v58  ;;  %v132_v2 = vadd.f32 %v131_v63, %v130_v59 }
  0xe3   :  { %238 = vpush %v132_v2  ;;  %v177_v6 = vrot.slane %v176_v1, 1 }
  0xe4   :  { %240 = vpush %v149_v3 }
  0xe5   :  { %242 = vpush %v162_v5  ;;  %v178_v7 = vadd.f32 %v177_v6, %v176_v1 }
  0xe7   :  { %244 = vpush %v178_v7 }
  0xe8   :  { %246 = vpush %v193_v8 }
 0x104   :  { %s235_s18 = spop %234 }
 0x105   :  { %s100_s19 = sadd.f32 %s235_s18, %s99_s17  ;;  %s237_s20 = spop %236 }
 0x107   :  { %s114_s0 = smul.f32 0.00048828125, %s100_s19 }
 0x108   :  { %s106_s22 = smul.f32 %s237_s20, %s100_s19 }
 0x109   :  { %203 = sst [smem:[#allocation10 + $0x1]] %s114_s0 }
 0x10a   :  { %s108_s23 = sadd.f32 %s107_s21, %s106_s22 }
 0x10c   :  { %s111_s24 = smul.f32 0.5, %s108_s23 }
 0x10e   :  { %201 = sst [smem:[#allocation10]] %s111_s24 }
 0x114   :  { %s239_s25 = spop %238 }
 0x115   :  { %s134_s26 = smul.f32 0.5, %s239_s25  ;;  %s241_s27 = spop %240 }
 0x116   :  { %s153_s28 = smul.f32 0.013888889, %s241_s27  ;;  %s243_s29 = spop %242 }
 0x117   :  { %s137_s30 = smul.f32 0.5, %s134_s26 }
 0x118   :  { %211 = sst [smem:[#allocation10 + $0x5]] %s153_s28  ;;  %s166_s8 = smul.f32 0.013888889, %s243_s29 }
 0x119   :  { %205 = sst [smem:[#allocation10 + $0x2]] %s137_s30  ;;  %s245_s1 = spop %244 }
 0x11a   :  { %s167_s9 = ssub.f32 0.0, %s166_s8  ;;  %s182_s10 = smul.f32 0.013888889, %s245_s1 }
 0x11b   :  { %213 = sst [smem:[#allocation10 + $0x6]] %s166_s8  ;;  %s247_s11 = spop %246 }
 0x11c   :  { %207 = sst [smem:[#allocation10 + $0x3]] %s167_s9  ;;  %s197_s12 = smul.f32 0.013888889, %s247_s11 }
 0x11e   :  { %s198_s2 = sadd.f32 %s197_s12, %s182_s10 }
 0x120   :  { %s199_s13 = smul.f32 0.5, %s198_s2 }
 0x122   :  { %209 = sst [smem:[#allocation10 + $0x4]] %s199_s13 }
 0x123   :  { %320 = shalt.err (!%p317_p7)
}
 0x124   :  { %s333_s17 = smov [#allocation10]  }
 0x125   :  { %223 = dma.smem_to_hbm %s333_s17, 16, %s449_s7, [#allocation6]  }
 0x126   :  { %327 = dma.done.wait [#allocation6], 16  }
 0x127   :  { %328 = vsyncadd [#allocation6], 4294967280 }
 0x128   :  { %227 = sfence }
 0x129   :  { %228 = vsyncpa [#allocation4], 1 }
 0x12a   :  { %229 = vsyncpa [#allocation9], 1 }
 0x12b   :  { %230 = vsyncpa [#allocation5], 1 }
 0x12c   :  { %231 = vsyncpa [#allocation6], 1 }

</bundles_post_ra>
